<compile_context>
chip_gen: v7x
topology: tpu7x:2x2x1
jax: 0.10.0
libtpu: 0.0.40
codegen_flags: <defaults>
</compile_context>

<pallas_src>
import jax
import jax.numpy as jnp
from jax.experimental import pallas as pl
from jax.experimental.pallas import tpu as pltpu


# ----------------------------- fused Pallas kernel -------------------------- #

def _make_decoder_kernel(n_layers):
    """Builds the fused decoder kernel for a static number of LSTM layers."""

    def kernel(*refs):
        # inputs : trg[B,1] i32, emb[V,E] bf16, hidden[N,B,H] f32, cell[N,B,H] f32,
        #          (w_cat_l [(E|H)+H, 4H] bf16, b_l [1,4H] f32) * n_layers,
        #          w_fc [H,V] bf16, b_fc [1,V] f32
        # outputs: pred[B,V] f32, h_out[N,B,H] f32, c_out[N,B,H] f32
        trg_ref, emb_ref, hidden_ref, cell_ref = refs[:4]
        layer_refs = refs[4:4 + 2 * n_layers]
        wfc_ref, bfc_ref = refs[4 + 2 * n_layers:6 + 2 * n_layers]
        pred_ref, hout_ref, cout_ref = refs[6 + 2 * n_layers:]

        B = trg_ref.shape[0]
        V, _E = emb_ref.shape
        H = hidden_ref.shape[-1]

        # Embedding lookup as one-hot @ table on the MXU (no data-dependent DMA).
        # Dropout on the embedded input = identity (eval mode).
        ids = trg_ref[...]                                           # [B, 1] i32
        lane = jax.lax.broadcasted_iota(jnp.int32, (B, V), 1)
        onehot = jnp.where(lane == ids, 1.0, 0.0).astype(jnp.bfloat16)
        x = jnp.dot(onehot, emb_ref[...],
                    preferred_element_type=jnp.float32)              # [B, E] f32

        for l in range(n_layers):
            w_ref = layer_refs[2 * l]        # [(in)+H, 4H] bf16, pre-stacked [w_ih; w_hh]
            b_ref = layer_refs[2 * l + 1]    # [1, 4H] f32, b_ih + b_hh
            h_prev = hidden_ref[l]           # [B, H] f32
            c_prev = cell_ref[l]             # [B, H] f32

            # Single fused matmul per cell: [x ; h] @ [w_ih ; w_hh]  (one MXU push).
            xh = jnp.concatenate([x, h_prev], axis=-1).astype(jnp.bfloat16)
            gates = jnp.dot(xh, w_ref[...],
                            preferred_element_type=jnp.float32) + b_ref[...]

            # PyTorch gate order: i, f, g, o.  Elementwise math kept in f32.
            i = jax.nn.sigmoid(gates[:, 0 * H:1 * H])
            f = jax.nn.sigmoid(gates[:, 1 * H:2 * H])
            g = jnp.tanh(gates[:, 2 * H:3 * H])
            o = jax.nn.sigmoid(gates[:, 3 * H:4 * H])
            c_new = f * c_prev + i * g
            h_new = o * jnp.tanh(c_new)

            hout_ref[l] = h_new
            cout_ref[l] = c_new
            x = h_new   # inter-layer dropout = identity in eval mode

        pred_ref[...] = (
            jnp.dot(x.astype(jnp.bfloat16), wfc_ref[...],
                    preferred_element_type=jnp.float32) + bfc_ref[...]
        )

    return kernel


# ------------------------------- host wrappers ------------------------------ #

def prepare_params(params):
    """One-time preprocessing: pre-stack [w_ih; w_hh] and cast MXU operands to bf16."""
    n_layers = len(params["w_ih"])
    return {
        "embedding": params["embedding"].astype(jnp.bfloat16),
        "w_cat": [jnp.concatenate([params["w_ih"][l], params["w_hh"][l]],
                                  axis=0).astype(jnp.bfloat16)
                  for l in range(n_layers)],
        "b": [params["b"][l] for l in range(n_layers)],          # f32 [1, 4H]
        "w_fc": params["w_fc"].astype(jnp.bfloat16),
        "b_fc": params["b_fc"],                                  # f32 [1, V]
    }


def decoder_forward(prepped, trg, hidden, cell):
    """
    trg:    [B] int32 token ids
    hidden: [n_layers, B, H] f32
    cell:   [n_layers, B, H] f32
    returns (prediction [B, V] f32, hidden [n_layers,B,H] f32, cell [n_layers,B,H] f32)
    """
    n_layers, B, H = hidden.shape
    V = prepped["embedding"].shape[0]

    trg2d = trg.reshape(B, 1).astype(jnp.int32)

    layer_args = []
    for l in range(n_layers):
        layer_args += [prepped["w_cat"][l], prepped["b"][l]]

    def vmem():
        return pl.BlockSpec(memory_space=pltpu.MemorySpace.VMEM)

    n_inputs = 4 + 2 * n_layers + 2
    pred, h_out, c_out = pl.pallas_call(
        _make_decoder_kernel(n_layers),
        out_shape=(
            jax.ShapeDtypeStruct((B, V), jnp.float32),
            jax.ShapeDtypeStruct((n_layers, B, H), jnp.float32),
            jax.ShapeDtypeStruct((n_layers, B, H), jnp.float32),
        ),
        in_specs=[vmem() for _ in range(n_inputs)],
        out_specs=(vmem(), vmem(), vmem()),
    )(trg2d, prepped["embedding"], hidden, cell, *layer_args,
      prepped["w_fc"], prepped["b_fc"])
    return pred, h_out, c_out


# ------------------------------ pure-JAX reference -------------------------- #

def decoder_forward_ref(params, trg, hidden, cell):
    x = params["embedding"][trg]
    n_layers = hidden.shape[0]
    new_h, new_c = [], []
    for layer in range(n_layers):
        h, c = hidden[layer], cell[layer]
        gates = x @ params["w_ih"][layer] + h @ params["w_hh"][layer] + params["b"][layer]
        H = h.shape[-1]
        i = jax.nn.sigmoid(gates[:, 0 * H:1 * H])
        f = jax.nn.sigmoid(gates[:, 1 * H:2 * H])
        g = jnp.tanh(gates[:, 2 * H:3 * H])
        o = jax.nn.sigmoid(gates[:, 3 * H:4 * H])
        c_new = f * c + i * g
        h_new = o * jnp.tanh(c_new)
        new_h.append(h_new)
        new_c.append(c_new)
        x = h_new
    pred = x @ params["w_fc"] + params["b_fc"]
    return pred, jnp.stack(new_h), jnp.stack(new_c)


# ------------------------------------ main ---------------------------------- #

if __name__ == "__main__":
    # Module config (small, consistent with the PyTorch __init__)
    OUTPUT_DIM = 64      # vocab size
    EMB_DIM = 32
    HID_DIM = 32
    N_LAYERS = 2
    BATCH = 8

    key = jax.random.PRNGKey(0)
    ks = jax.random.split(key, 8 + 4 * N_LAYERS)

    def init(k, shape, scale=0.1):
        return (scale * jax.random.normal(k, shape)).astype(jnp.float32)

    params = {
        "embedding": init(ks[0], (OUTPUT_DIM, EMB_DIM)),
        # LSTM weights, pre-transposed to [in, 4H]; bias = b_ih + b_hh combined, shape [1, 4H]
        "w_ih": [init(ks[1 + 3 * l], (EMB_DIM if l == 0 else HID_DIM, 4 * HID_DIM))
                 for l in range(N_LAYERS)],
        "w_hh": [init(ks[2 + 3 * l], (HID_DIM, 4 * HID_DIM)) for l in range(N_LAYERS)],
        "b":    [init(ks[3 + 3 * l], (1, 4 * HID_DIM)) for l in range(N_LAYERS)],
        # fc: Linear(dec_hidden_dim, output_dim), pre-transposed to [H, output_dim]
        "w_fc": init(ks[3 * N_LAYERS + 1], (HID_DIM, OUTPUT_DIM)),
        "b_fc": init(ks[3 * N_LAYERS + 2], (1, OUTPUT_DIM)),
    }

    trg = jax.random.randint(ks[3 * N_LAYERS + 3], (BATCH,), 0, OUTPUT_DIM, dtype=jnp.int32)
    hidden0 = init(ks[3 * N_LAYERS + 4], (N_LAYERS, BATCH, HID_DIM), scale=0.5)
    cell0 = init(ks[3 * N_LAYERS + 5], (N_LAYERS, BATCH, HID_DIM), scale=0.5)

    prepped = prepare_params(params)
    pred, hidden, cell = decoder_forward(prepped, trg, hidden0, cell0)
    jax.block_until_ready((pred, hidden, cell))

    # sanity check against pure-f32 JAX reference (kernel uses bf16 MXU operands,
    # so the tolerance is loosened accordingly)
    pred_r, hidden_r, cell_r = decoder_forward_ref(params, trg, hidden0, cell0)
    assert pred.shape == (BATCH, OUTPUT_DIM)
    assert hidden.shape == (N_LAYERS, BATCH, HID_DIM)
    assert cell.shape == (N_LAYERS, BATCH, HID_DIM)
    assert jnp.allclose(pred, pred_r, atol=2e-2, rtol=2e-2)
    assert jnp.allclose(hidden, hidden_r, atol=2e-2, rtol=2e-2)
    assert jnp.allclose(cell, cell_r, atol=2e-2, rtol=2e-2)

    print("KERNEL_OK")
</pallas_src>

<mosaic_0001>
module attributes {stable_mosaic.version = 11 : i64} {
  func.func @kernel(%arg0: memref<8x1xi32, #tpu.memory_space<vmem>>, %arg1: memref<64x32xbf16, #tpu.memory_space<vmem>>, %arg2: memref<2x8x32xf32, #tpu.memory_space<vmem>>, %arg3: memref<2x8x32xf32, #tpu.memory_space<vmem>>, %arg4: memref<64x128xbf16, #tpu.memory_space<vmem>>, %arg5: memref<1x128xf32, #tpu.memory_space<vmem>>, %arg6: memref<64x128xbf16, #tpu.memory_space<vmem>>, %arg7: memref<1x128xf32, #tpu.memory_space<vmem>>, %arg8: memref<32x64xbf16, #tpu.memory_space<vmem>>, %arg9: memref<1x64xf32, #tpu.memory_space<vmem>>, %arg10: memref<8x64xf32, #tpu.memory_space<vmem>>, %arg11: memref<2x8x32xf32, #tpu.memory_space<vmem>>, %arg12: memref<2x8x32xf32, #tpu.memory_space<vmem>>) attributes {dimension_semantics = [], scalar_prefetch = 0 : i64, scratch_operands = 0 : i64, tpu.core_type = #tpu.core_type<tc>} {
    %c0 = arith.constant 0 : index
    %c0_0 = arith.constant 0 : index
    %0 = vector.load %arg0[%c0, %c0_0] : memref<8x1xi32, #tpu.memory_space<vmem>>, vector<8x1xi32>
    %1 = tpu.iota {dimensions = array<i32: 1>} : vector<8x64xi32>
    %2 = vector.broadcast %0 : vector<8x1xi32> to vector<8x64xi32>
    %3 = arith.cmpi eq, %1, %2 : vector<8x64xi32>
    %cst = arith.constant 1.000000e+00 : f32
    %cst_1 = arith.constant 0.000000e+00 : f32
    %4 = vector.broadcast %cst : f32 to vector<8x64xf32>
    %5 = vector.broadcast %cst_1 : f32 to vector<8x64xf32>
    %6 = arith.select %3, %4, %5 : vector<8x64xi1>, vector<8x64xf32>
    %7 = arith.truncf %6 : vector<8x64xf32> to vector<8x64xbf16>
    %c0_2 = arith.constant 0 : index
    %c0_3 = arith.constant 0 : index
    %8 = vector.load %arg1[%c0_2, %c0_3] : memref<64x32xbf16, #tpu.memory_space<vmem>>, vector<64x32xbf16>
    %cst_4 = arith.constant dense<0.000000e+00> : vector<8x32xf32>
    %9 = tpu.matmul %7, %8, %cst_4 {dimension_numbers = #tpu.dot_dimension_numbers<[1], [0], [0], [1], [0, 0, 1, 1], [], []>} : vector<8x64xbf16>, vector<64x32xbf16>, vector<8x32xf32> -> vector<8x32xf32>
    %c0_5 = arith.constant 0 : index
    %c0_6 = arith.constant 0 : index
    %c0_7 = arith.constant 0 : index
    %10 = vector.load %arg2[%c0_5, %c0_6, %c0_7] : memref<2x8x32xf32, #tpu.memory_space<vmem>>, vector<1x8x32xf32>
    %11 = vector.shape_cast %10 : vector<1x8x32xf32> to vector<8x32xf32>
    %c0_8 = arith.constant 0 : index
    %c0_9 = arith.constant 0 : index
    %c0_10 = arith.constant 0 : index
    %12 = vector.load %arg3[%c0_8, %c0_9, %c0_10] : memref<2x8x32xf32, #tpu.memory_space<vmem>>, vector<1x8x32xf32>
    %13 = vector.shape_cast %12 : vector<1x8x32xf32> to vector<8x32xf32>
    %14 = tpu.concatenate %9, %11 in 1 : vector<8x32xf32>, vector<8x32xf32> -> vector<8x64xf32>
    %15 = arith.truncf %14 : vector<8x64xf32> to vector<8x64xbf16>
    %c0_11 = arith.constant 0 : index
    %c0_12 = arith.constant 0 : index
    %16 = vector.load %arg4[%c0_11, %c0_12] : memref<64x128xbf16, #tpu.memory_space<vmem>>, vector<64x128xbf16>
    %cst_13 = arith.constant dense<0.000000e+00> : vector<8x128xf32>
    %17 = tpu.matmul %15, %16, %cst_13 {dimension_numbers = #tpu.dot_dimension_numbers<[1], [0], [0], [1], [0, 0, 1, 1], [], []>} : vector<8x64xbf16>, vector<64x128xbf16>, vector<8x128xf32> -> vector<8x128xf32>
    %c0_14 = arith.constant 0 : index
    %c0_15 = arith.constant 0 : index
    %18 = vector.load %arg5[%c0_14, %c0_15] : memref<1x128xf32, #tpu.memory_space<vmem>>, vector<1x128xf32>
    %19 = vector.broadcast %18 : vector<1x128xf32> to vector<8x128xf32>
    %20 = arith.addf %17, %19 : vector<8x128xf32>
    %21 = vector.extract_strided_slice %20 {offsets = [0, 0], sizes = [8, 32], strides = [1, 1]} : vector<8x128xf32> to vector<8x32xf32>
    %22 = arith.negf %21 : vector<8x32xf32>
    %23 = math.exp %22 : vector<8x32xf32>
    %cst_16 = arith.constant 1.000000e+00 : f32
    %24 = vector.broadcast %cst_16 : f32 to vector<8x32xf32>
    %25 = arith.addf %24, %23 : vector<8x32xf32>
    %26 = arith.divf %24, %25 : vector<8x32xf32>
    %27 = vector.extract_strided_slice %20 {offsets = [0, 32], sizes = [8, 32], strides = [1, 1]} : vector<8x128xf32> to vector<8x32xf32>
    %28 = arith.negf %27 : vector<8x32xf32>
    %29 = math.exp %28 : vector<8x32xf32>
    %cst_17 = arith.constant 1.000000e+00 : f32
    %30 = vector.broadcast %cst_17 : f32 to vector<8x32xf32>
    %31 = arith.addf %30, %29 : vector<8x32xf32>
    %32 = arith.divf %30, %31 : vector<8x32xf32>
    %33 = vector.extract_strided_slice %20 {offsets = [0, 64], sizes = [8, 32], strides = [1, 1]} : vector<8x128xf32> to vector<8x32xf32>
    %34 = math.tanh %33 : vector<8x32xf32>
    %35 = vector.extract_strided_slice %20 {offsets = [0, 96], sizes = [8, 32], strides = [1, 1]} : vector<8x128xf32> to vector<8x32xf32>
    %36 = arith.negf %35 : vector<8x32xf32>
    %37 = math.exp %36 : vector<8x32xf32>
    %cst_18 = arith.constant 1.000000e+00 : f32
    %38 = vector.broadcast %cst_18 : f32 to vector<8x32xf32>
    %39 = arith.addf %38, %37 : vector<8x32xf32>
    %40 = arith.divf %38, %39 : vector<8x32xf32>
    %41 = arith.mulf %32, %13 : vector<8x32xf32>
    %42 = arith.mulf %26, %34 : vector<8x32xf32>
    %43 = arith.addf %41, %42 : vector<8x32xf32>
    %44 = math.tanh %43 : vector<8x32xf32>
    %45 = arith.mulf %40, %44 : vector<8x32xf32>
    %c0_19 = arith.constant 0 : index
    %c0_20 = arith.constant 0 : index
    %c0_21 = arith.constant 0 : index
    %46 = vector.load %arg11[%c0_19, %c0_20, %c0_21] : memref<2x8x32xf32, #tpu.memory_space<vmem>>, vector<1x8x32xf32>
    %47 = vector.shape_cast %46 : vector<1x8x32xf32> to vector<8x32xf32>
    %48 = vector.shape_cast %45 : vector<8x32xf32> to vector<1x8x32xf32>
    tpu.vector_store %arg11[%c0_19, %c0_20, %c0_21], %48 {strides = array<i32>} : memref<2x8x32xf32, #tpu.memory_space<vmem>>, vector<1x8x32xf32>,
    %c0_22 = arith.constant 0 : index
    %c0_23 = arith.constant 0 : index
    %c0_24 = arith.constant 0 : index
    %49 = vector.load %arg12[%c0_22, %c0_23, %c0_24] : memref<2x8x32xf32, #tpu.memory_space<vmem>>, vector<1x8x32xf32>
    %50 = vector.shape_cast %49 : vector<1x8x32xf32> to vector<8x32xf32>
    %51 = vector.shape_cast %43 : vector<8x32xf32> to vector<1x8x32xf32>
    tpu.vector_store %arg12[%c0_22, %c0_23, %c0_24], %51 {strides = array<i32>} : memref<2x8x32xf32, #tpu.memory_space<vmem>>, vector<1x8x32xf32>,
    %c1 = arith.constant 1 : index
    %c0_25 = arith.constant 0 : index
    %c0_26 = arith.constant 0 : index
    %52 = vector.load %arg2[%c1, %c0_25, %c0_26] : memref<2x8x32xf32, #tpu.memory_space<vmem>>, vector<1x8x32xf32>
    %53 = vector.shape_cast %52 : vector<1x8x32xf32> to vector<8x32xf32>
    %c1_27 = arith.constant 1 : index
    %c0_28 = arith.constant 0 : index
    %c0_29 = arith.constant 0 : index
    %54 = vector.load %arg3[%c1_27, %c0_28, %c0_29] : memref<2x8x32xf32, #tpu.memory_space<vmem>>, vector<1x8x32xf32>
    %55 = vector.shape_cast %54 : vector<1x8x32xf32> to vector<8x32xf32>
    %56 = tpu.concatenate %45, %53 in 1 : vector<8x32xf32>, vector<8x32xf32> -> vector<8x64xf32>
    %57 = arith.truncf %56 : vector<8x64xf32> to vector<8x64xbf16>
    %c0_30 = arith.constant 0 : index
    %c0_31 = arith.constant 0 : index
    %58 = vector.load %arg6[%c0_30, %c0_31] : memref<64x128xbf16, #tpu.memory_space<vmem>>, vector<64x128xbf16>
    %cst_32 = arith.constant dense<0.000000e+00> : vector<8x128xf32>
    %59 = tpu.matmul %57, %58, %cst_32 {dimension_numbers = #tpu.dot_dimension_numbers<[1], [0], [0], [1], [0, 0, 1, 1], [], []>} : vector<8x64xbf16>, vector<64x128xbf16>, vector<8x128xf32> -> vector<8x128xf32>
    %c0_33 = arith.constant 0 : index
    %c0_34 = arith.constant 0 : index
    %60 = vector.load %arg7[%c0_33, %c0_34] : memref<1x128xf32, #tpu.memory_space<vmem>>, vector<1x128xf32>
    %61 = vector.broadcast %60 : vector<1x128xf32> to vector<8x128xf32>
    %62 = arith.addf %59, %61 : vector<8x128xf32>
    %63 = vector.extract_strided_slice %62 {offsets = [0, 0], sizes = [8, 32], strides = [1, 1]} : vector<8x128xf32> to vector<8x32xf32>
    %64 = arith.negf %63 : vector<8x32xf32>
    %65 = math.exp %64 : vector<8x32xf32>
    %cst_35 = arith.constant 1.000000e+00 : f32
    %66 = vector.broadcast %cst_35 : f32 to vector<8x32xf32>
    %67 = arith.addf %66, %65 : vector<8x32xf32>
    %68 = arith.divf %66, %67 : vector<8x32xf32>
    %69 = vector.extract_strided_slice %62 {offsets = [0, 32], sizes = [8, 32], strides = [1, 1]} : vector<8x128xf32> to vector<8x32xf32>
    %70 = arith.negf %69 : vector<8x32xf32>
    %71 = math.exp %70 : vector<8x32xf32>
    %cst_36 = arith.constant 1.000000e+00 : f32
    %72 = vector.broadcast %cst_36 : f32 to vector<8x32xf32>
    %73 = arith.addf %72, %71 : vector<8x32xf32>
    %74 = arith.divf %72, %73 : vector<8x32xf32>
    %75 = vector.extract_strided_slice %62 {offsets = [0, 64], sizes = [8, 32], strides = [1, 1]} : vector<8x128xf32> to vector<8x32xf32>
    %76 = math.tanh %75 : vector<8x32xf32>
    %77 = vector.extract_strided_slice %62 {offsets = [0, 96], sizes = [8, 32], strides = [1, 1]} : vector<8x128xf32> to vector<8x32xf32>
    %78 = arith.negf %77 : vector<8x32xf32>
    %79 = math.exp %78 : vector<8x32xf32>
    %cst_37 = arith.constant 1.000000e+00 : f32
    %80 = vector.broadcast %cst_37 : f32 to vector<8x32xf32>
    %81 = arith.addf %80, %79 : vector<8x32xf32>
    %82 = arith.divf %80, %81 : vector<8x32xf32>
    %83 = arith.mulf %74, %55 : vector<8x32xf32>
    %84 = arith.mulf %68, %76 : vector<8x32xf32>
    %85 = arith.addf %83, %84 : vector<8x32xf32>
    %86 = math.tanh %85 : vector<8x32xf32>
    %87 = arith.mulf %82, %86 : vector<8x32xf32>
    %c1_38 = arith.constant 1 : index
    %c0_39 = arith.constant 0 : index
    %c0_40 = arith.constant 0 : index
    %88 = vector.load %arg11[%c1_38, %c0_39, %c0_40] : memref<2x8x32xf32, #tpu.memory_space<vmem>>, vector<1x8x32xf32>
    %89 = vector.shape_cast %88 : vector<1x8x32xf32> to vector<8x32xf32>
    %90 = vector.shape_cast %87 : vector<8x32xf32> to vector<1x8x32xf32>
    tpu.vector_store %arg11[%c1_38, %c0_39, %c0_40], %90 {strides = array<i32>} : memref<2x8x32xf32, #tpu.memory_space<vmem>>, vector<1x8x32xf32>,
    %c1_41 = arith.constant 1 : index
    %c0_42 = arith.constant 0 : index
    %c0_43 = arith.constant 0 : index
    %91 = vector.load %arg12[%c1_41, %c0_42, %c0_43] : memref<2x8x32xf32, #tpu.memory_space<vmem>>, vector<1x8x32xf32>
    %92 = vector.shape_cast %91 : vector<1x8x32xf32> to vector<8x32xf32>
    %93 = vector.shape_cast %85 : vector<8x32xf32> to vector<1x8x32xf32>
    tpu.vector_store %arg12[%c1_41, %c0_42, %c0_43], %93 {strides = array<i32>} : memref<2x8x32xf32, #tpu.memory_space<vmem>>, vector<1x8x32xf32>,
    %94 = arith.truncf %87 : vector<8x32xf32> to vector<8x32xbf16>
    %c0_44 = arith.constant 0 : index
    %c0_45 = arith.constant 0 : index
    %95 = vector.load %arg8[%c0_44, %c0_45] : memref<32x64xbf16, #tpu.memory_space<vmem>>, vector<32x64xbf16>
    %cst_46 = arith.constant dense<0.000000e+00> : vector<8x64xf32>
    %96 = tpu.matmul %94, %95, %cst_46 {dimension_numbers = #tpu.dot_dimension_numbers<[1], [0], [0], [1], [0, 0, 1, 1], [], []>} : vector<8x32xbf16>, vector<32x64xbf16>, vector<8x64xf32> -> vector<8x64xf32>
    %c0_47 = arith.constant 0 : index
    %c0_48 = arith.constant 0 : index
    %97 = vector.load %arg9[%c0_47, %c0_48] : memref<1x64xf32, #tpu.memory_space<vmem>>, vector<1x64xf32>
    %98 = vector.broadcast %97 : vector<1x64xf32> to vector<8x64xf32>
    %99 = arith.addf %96, %98 : vector<8x64xf32>
    %c0_49 = arith.constant 0 : index
    %c0_50 = arith.constant 0 : index
    %100 = vector.load %arg10[%c0_49, %c0_50] : memref<8x64xf32, #tpu.memory_space<vmem>>, vector<8x64xf32>
    tpu.vector_store %arg10[%c0_49, %c0_50], %99 {strides = array<i32>} : memref<8x64xf32, #tpu.memory_space<vmem>>, vector<8x64xf32>,
    return
  }
}

</mosaic_0001>

<bundles_post_ra>
// kernel: tpu_custom_call.1
= control target key start
LH: loop header
LB: loop body
LE: loop exit
PB: predicated region body
PF: predicated region fallthrough
CT: control target
= control target key end

     0   :  { %18 = vsyncpa [#allocation3], 0  ;;  %s1035_s0 = inlined_call_operand.vmem [shape: s32[8,1], index: 0, kind: input, shape index: {}]   ;;  %s1036_s1 = inlined_call_operand.vmem [shape: bf16[64,32], index: 1, kind: input, shape index: {}]   ;;  %s1037_s2 = inlined_call_operand.hbm [shape: f32[2,8,32], index: 2, kind: input, shape index: {}]   ;;  %s1038_s3 = inlined_call_operand.hbm [shape: f32[2,8,32], index: 3, kind: input, shape index: {}]   ;;  %s1039_s4 = inlined_call_operand.vmem [shape: bf16[64,128], index: 4, kind: input, shape index: {}]   ;;  %s1040_s5 = inlined_call_operand.vmem [shape: f32[1,128], index: 5, kind: input, shape index: {}]   ;;  %s1041_s6 = inlined_call_operand.vmem [shape: bf16[64,128], index: 6, kind: input, shape index: {}]   ;;  %s1042_s7 = inlined_call_operand.vmem [shape: f32[1,128], index: 7, kind: input, shape index: {}]   ;;  %s1043_s8 = inlined_call_operand.vmem [shape: bf16[32,64], index: 8, kind: input, shape index: {}]   ;;  %s1044_s9 = inlined_call_operand.vmem [shape: f32[1,64], index: 9, kind: input, shape index: {}]   ;;  %s1045_s10 = inlined_call_operand.hbm [shape: f32[8,64], index: 10, kind: output, shape index: {0}]   ;;  %s1046_s11 = inlined_call_operand.hbm [shape: f32[2,8,32], index: 11, kind: output, shape index: {1}]   ;;  %s1047_s12 = inlined_call_operand.hbm [shape: f32[2,8,32], index: 12, kind: output, shape index: {2}]  }
   0x1   :  { %19 = vsyncpa [#allocation6], 0 }
   0x2   :  { %20 = vsyncpa [#allocation4], 0 }
   0x3   :  { %21 = vsyncpa [#allocation9], 0  ;;  %s780_s21 = smov [#allocation2]   ;;  %s662_s25 = scalar_lea.hbm %s1037_s2, 256 }
   0x4   :  { %s31_s22 = sshll.u32 %s780_s21, 4  ;;  %p663_p0 = scmp.ne.s32.totalorder %s1037_s2, %s662_s25  ;;  %s32_s22 = int_to_ptr.vmem [resolvable:$true] %s31_s22 }
   0x5   :  { %p666_p1 = scmp.lt.u32.totalorder %s662_s25, %s1037_s2 }
   0x7   :  { %p668_p2 = pnand %p666_p1, %p663_p0 }
   0x9   :  { %671 = shalt.err (!%p668_p2)
}
   0xa   :  { %s672_s30 = scalar_lea.vmem %s32_s22, 256  ;;  %p677_p4 = scmp.lt.s32.totalorder %s32_s22, %s32_s22 }
   0xb   :  { %p673_p3 = scmp.ne.s32.totalorder %s32_s22, %s672_s30  ;;  %p678_p5 = scmp.lt.s32.totalorder %s672_s30, %s672_s30 }
   0xd   :  { %p679_p6 = por %p678_p5, %p677_p4 }
   0xf   :  { %p680_p7 = pnand %p679_p6, %p673_p3 }
  0x11   :  { %683 = shalt.err (!%p680_p7)
}
  0x12   :  { %s781_s13 = smov 128   ;;  %s782_s14 = smov 8  }
  0x13   :  { %37 = dma.hbm_to_vmem [thread:$0]  %s1037_s2, 256, %s32_s22, [#allocation3], %s781_s13, %s781_s13, %s782_s14  }
  0x14   :  { %s783_s17 = smov [#allocation5]   ;;  %s684_s21 = scalar_lea.hbm %s1038_s3, 256 }
  0x15   :  { %s43_s18 = sshll.u32 %s783_s17, 4  ;;  %p685_p8 = scmp.ne.s32.totalorder %s1038_s3, %s684_s21  ;;  %s44_s18 = int_to_ptr.vmem [resolvable:$true] %s43_s18 }
  0x16   :  { %p688_p9 = scmp.lt.u32.totalorder %s684_s21, %s1038_s3 }
  0x18   :  { %p690_p10 = pnand %p688_p9, %p685_p8 }
  0x1a   :  { %693 = shalt.err (!%p690_p10)
}
  0x1b   :  { %s694_s27 = scalar_lea.vmem %s44_s18, 256  ;;  %p699_p12 = scmp.lt.s32.totalorder %s44_s18, %s44_s18 }
  0x1c   :  { %p695_p11 = scmp.ne.s32.totalorder %s44_s18, %s694_s27  ;;  %p700_p13 = scmp.lt.s32.totalorder %s694_s27, %s694_s27 }
  0x1e   :  { %p701_p0 = por %p700_p13, %p699_p12 }
  0x20   :  { %p702_p1 = pnand %p701_p0, %p695_p11 }
  0x22   :  { %705 = shalt.err (!%p702_p1)
}
  0x23   :  { %49 = dma.hbm_to_vmem [thread:$0]  %s1038_s3, 256, %s44_s18, [#allocation6], %s781_s13, %s781_s13, %s782_s14  }
  0x24   :  { %772 = dma.done.wait [#allocation3], 256  }
  0x25   :  { %773 = vsyncadd [#allocation3], 4294967040 }
  0x26   :  { %774 = dma.done.wait [#allocation6], 256  }
  0x27   :  { %775 = vsyncadd [#allocation6], 4294967040  ;;  %v784_v0 = vmov 0   ;;  %v785_v1 = vmov 0.0   ;;  %v69_v2 = vld [vmem:[%s1035_s0] sm:$0xff]  ;;  %v633_v4 = vld [vmem:[%s1036_s1 + $0x8] sm:$0xff]   ;;  %v70_v11 = vlaneseq }
  0x28   :  { %631 = vset.pattern.permute.xlu0 %v784_v0  ;;  %574 = vmatprep.subr.bf16.mxu0 %v785_v1  ;;  %v632_v3 = vld [vmem:[%s1036_s1] sm:$0xff]   ;;  %vm786_vm0 = vmmov 0   ;;  %v154_v5 = vld [vmem:[#allocation2] sm:$0xff]  ;;  %v634_v7 = vld [vmem:[%s1036_s1 + $0x10] sm:$0xff]   ;;  %s787_s20 = smov 32   ;;  %vm110_vm2 = vcmask 523264  }
  0x29   :  { %586 = vmatprep.subr.bf16.mxu1 %v785_v1  ;;  %73 = vperm.xlu0 %631, %v69_v2   ;;  %v636_v6 = vld [vmem:[%s1039_s4] sm:$0xff]   ;;  %v637_v8 = vld [vmem:[%s1039_s4 + $0x8] sm:$0xff]   ;;  %v635_v9 = vld [vmem:[%s1036_s1 + $0x18] sm:$0xff]   ;;  %v71_v12 = vand.u32 127, %v70_v11  ;;  %vm160_vm3 = vcmask 261120   ;;  %s789_s24 = smov 96  }
  0x2a   :  { %575 = vmatpush3.bf16.msra.mxu0 %v632_v3  ;;  %582 = vmatprep.mubr.msk.bf16.mxu0 %vm786_vm0, %v785_v1  ;;  %v638_v10 = vld [vmem:[%s1039_s4 + $0x10] sm:$0xff]   ;;  %v639_v16 = vld [vmem:[%s1039_s4 + $0x18] sm:$0xff]   ;;  %v538_v24 = vld [vmem:[%s1040_s5] ss:$0 sm:$0xff]  ;;  %s788_s4 = smov 64  }
  0x2b   :  { %576 = vmatprep.subr.bf16.mxu0 %v785_v1  ;;  %594 = vmatprep.mubr.msk.bf16.mxu1 %vm786_vm0, %v785_v1  ;;  %v155_v31 = vld [vmem:[#allocation5] sm:$0xff]  ;;  %v640_v42 = vld [vmem:[%s1041_s6] sm:$0xff]   ;;  %v641_v43 = vld [vmem:[%s1041_s6 + $0x8] sm:$0xff]  }
  0x2c   :  { %587 = vmatpush3.bf16.msra.mxu1 %v636_v6  ;;  %v642_v44 = vld [vmem:[%s1041_s6 + $0x10] sm:$0xff]   ;;  %v643_v47 = vld [vmem:[%s1041_s6 + $0x18] sm:$0xff]   ;;  %v286_v48 = vld [vmem:[#allocation5 + $0x8] sm:$0xff] }
  0x2d   :  { %157 = vrot.lane.b32.xlu0 %v154_v5, %s787_s20  ;;  %588 = vmatprep.subr.bf16.mxu1 %v785_v1  ;;  %v284_v46 = vld [vmem:[#allocation2 + $0x8] sm:$0xff]  ;;  %v545_v55 = vld [vmem:[%s1042_s7] ss:$0 sm:$0xff] }
  0x2e   :  { %577 = vmatpush3.bf16.msra.mxu0 %v633_v4 }
  0x2f   :  { %578 = vmatprep.subr.bf16.mxu0 %v785_v1 }
  0x30   :  { %589 = vmatpush3.bf16.msra.mxu1 %v637_v8 }
  0x31   :  { %590 = vmatprep.subr.bf16.mxu1 %v785_v1 }
  0x32   :  { %579 = vmatpush3.bf16.msra.mxu0 %v634_v7 }
  0x33   :  { %580 = vmatprep.subr.bf16.mxu0 %v785_v1 }
  0x34   :  { %591 = vmatpush3.bf16.msra.mxu1 %v638_v10  ;;  %v645_v10 = vld [vmem:[%s1043_s8 + $0x8] sm:$0xff]  }
  0x35   :  { %592 = vmatprep.subr.bf16.mxu1 %v785_v1 }
  0x36   :  { %581 = vmatpush3.bf16.msra.mxu0 %v635_v9  ;;  %v644_v9 = vld [vmem:[%s1043_s8] sm:$0xff]   ;;  %s790_s8 = smov [#allocation8]  }
  0x37   :  { %598 = vmatprep.subr.bf16.mxu0 %v785_v1  ;;  %s501_s25 = sshll.u32 %s790_s8, 4  ;;  %s502_s25 = int_to_ptr.vmem [resolvable:$true] %s501_s25 }
  0x38   :  { %593 = vmatpush3.bf16.msra.mxu1 %v639_v16  ;;  %p711_p3 = scmp.lt.s32.totalorder %s502_s25, %s502_s25 }
  0x39   :  { %610 = vmatprep.subr.bf16.mxu1 %v785_v1 }
  0xa8   :  { %v74_v13 = vpop.permute.xlu0 %73 }
  0xa9   :  { %vm75_vm1 = vcmp.eq.s32.totalorder %v71_v12, %v74_v13 }
  0xaa   :  { %v76_v14 = vsel %vm75_vm1, 1.0, %v785_v1 }
  0xab   :  { %v77_v15 = vpack.c.bf16 %v76_v14, %v76_v14 }
  0xac   :  { %v158_v17 = vpop.permute.xlu0 %157 }
  0xad   :  { %583 = vmatmul.mubr.msk.bf16.vlgmr.msra.gmra.mrb[0].mxu0 %vm110_vm2, %v77_v15 }
  0xae   :  { %606 = vmatprep.mubr.msk.bf16.mxu0 %vm786_vm0, %v785_v1  ;;  %599 = vmatpush3.bf16.msra.mxu0 %v640_v42 }
  0xaf   :  { %600 = vmatprep.subr.bf16.mxu0 %v785_v1 }
  0xb2   :  { %601 = vmatpush3.bf16.msra.mxu0 %v641_v43 }
  0xb3   :  { %602 = vmatprep.subr.bf16.mxu0 %v785_v1 }
  0xb6   :  { %603 = vmatpush3.bf16.msra.mxu0 %v642_v44 }
  0xb7   :  { %604 = vmatprep.subr.bf16.mxu0 %v785_v1 }
  0xba   :  { %605 = vmatpush3.bf16.msra.mxu0 %v643_v47 }
 0x180   :  { %v148_v18 = vpop.f32.mrb[0].mxu0 }
 0x181   :  { %v161_v19 = vsel %vm160_vm3, %v148_v18, %v158_v17  ;;  %v584_v20 = vpop.f32.mrb[1].mxu0 }
 0x182   :  { %v162_v21 = vpack.c.bf16 %v161_v19, %v161_v19  ;;  %v151_v22 = vpop.f32.mrb[2].mxu0 }
 0x183   :  { %v585_v23 = vpop.f32.mrb[3].mxu0 }
 0x184   :  { %595 = vmatmul.mubr.msk.bf16.vlgmr.msra.gmra.mrb[0].mxu1 %vm110_vm2, %v162_v21 }
 0x185   :  { %614 = vmatprep.mubr.msk.bf16.mxu1 %vm786_vm0, %v785_v1  ;;  %611 = vmatpush3.bf16.msra.mxu1 %v644_v9 }
 0x186   :  { %612 = vmatprep.subr.bf16.mxu1 %v785_v1 }
 0x189   :  { %613 = vmatpush3.bf16.msra.mxu1 %v645_v10 }
 0x257   :  { %v239_v25 = vpop.f32.mrb[0].mxu1 }
 0x258   :  { %v240_v26 = vadd.f32 %v538_v24, %v239_v25  ;;  %v596_v27 = vpop.f32.mrb[1].mxu1 }
 0x259   :  { %v242_v28 = vpop.f32.mrb[2].mxu1 }
 0x25a   :  { %646 = vtanh.f32 %v240_v26  ;;  %v597_v29 = vpop.f32.mrb[3].mxu1  ;;  %v544_v32 = vmul.f32 -1.442695, %v240_v26 }
 0x25c   :  { %648 = vpow2.f32 %v544_v32 }
 0x264   :  { %v647_v30 = vpop.eup %646 }
 0x265   :  { %258 = vrot.lane.b32.xlu1 %v647_v30, %s788_s4 }
 0x266   :  { %v649_v33 = vpop.eup %648 }
 0x267   :  { %v248_v34 = vadd.f32 1.0, %v649_v33 }
 0x269   :  { %253 = vrot.lane.b32.xlu1 %v155_v31, %s787_s20  ;;  %650 = vrcp.f32 %v248_v34 }
 0x273   :  { %v651_v35 = vpop.eup %650 }
 0x2d7   :  { %v259_v36 = vpop.permute.xlu1 %258 }
 0x2d8   :  { %v261_v37 = vmul.f32 %v651_v35, %v259_v36 }
 0x2da   :  { %263 = vrot.lane.b32.xlu0 %v261_v37, %s787_s20 }
 0x2db   :  { %v254_v38 = vpop.permute.xlu1 %253 }
 0x2dc   :  { %v256_v39 = vmul.f32 %v651_v35, %v254_v38 }
 0x34c   :  { %v264_v40 = vpop.permute.xlu0 %263 }
 0x34d   :  { %v944_v41 = vadd.f32 %v264_v40, %v256_v39 }
 0x34f   :  { %652 = vtanh.f32 %v944_v41 }
 0x359   :  { %v653_v45 = vpop.eup %652 }
 0x35a   :  { %269 = vrot.lane.b32.xlu1 %v653_v45, %s788_s4 }
 0x35e   :  { %288 = vrot.lane.b32.xlu1 %v284_v46, %s787_s20 }
 0x362   :  { %383 = vrot.lane.b32.xlu1 %v286_v48, %s787_s20 }
 0x3cc   :  { %v270_v49 = vpop.permute.xlu1 %269 }
 0x3cd   :  { %v272_v50 = vmul.f32 %v651_v35, %v270_v49 }
 0x3cf   :  { %274 = vrot.lane.b32.xlu0 %v272_v50, %s787_s20 }
 0x3d0   :  { %v289_v51 = vpop.permute.xlu1 %288 }
 0x3d4   :  { %v384_v5 = vpop.permute.xlu1 %383 }
 0x441   :  { %v275_v52 = vpop.permute.xlu0 %274 }
 0x442   :  { %277 = vst.msk [vmem:[#allocation8] sm:$0xff] %vm160_vm3, %v275_v52  ;;  %v291_v53 = vsel %vm160_vm3, %v275_v52, %v289_v51 }
 0x443   :  { %v292_v54 = vpack.c.bf16 %v291_v53, %v291_v53 }
 0x445   :  { %607 = vmatmul.mubr.msk.bf16.vlgmr.msra.gmra.mrb[4].mxu0 %vm110_vm2, %v292_v54 }
 0x518   :  { %v369_v56 = vpop.f32.mrb[4].mxu0 }
 0x519   :  { %v370_v57 = vadd.f32 %v545_v55, %v369_v56  ;;  %v608_v58 = vpop.f32.mrb[5].mxu0 }
 0x51a   :  { %v372_v59 = vpop.f32.mrb[6].mxu0 }
 0x51b   :  { %654 = vtanh.f32 %v370_v57  ;;  %v609_v60 = vpop.f32.mrb[7].mxu0  ;;  %v551_v62 = vmul.f32 -1.442695, %v370_v57 }
 0x51d   :  { %656 = vpow2.f32 %v551_v62 }
 0x525   :  { %v655_v61 = vpop.eup %654 }
 0x526   :  { %388 = vrot.lane.b32.xlu0 %v655_v61, %s788_s4 }
 0x527   :  { %v657_v63 = vpop.eup %656 }
 0x528   :  { %v378_v0 = vadd.f32 1.0, %v657_v63 }
 0x52a   :  { %658 = vrcp.f32 %v378_v0 }
 0x534   :  { %v659_v2 = vpop.eup %658 }
 0x535   :  { %v386_v6 = vmul.f32 %v659_v2, %v384_v5 }
 0x598   :  { %v389_v3 = vpop.permute.xlu0 %388 }
 0x599   :  { %v391_v4 = vmul.f32 %v659_v2, %v389_v3 }
 0x59b   :  { %393 = vrot.lane.b32.xlu0 %v391_v4, %s787_s20 }
 0x60d   :  { %v394_v7 = vpop.permute.xlu0 %393 }
 0x60e   :  { %v396_v8 = vadd.f32 %v394_v7, %v386_v6 }
 0x610   :  { %660 = vtanh.f32 %v396_v8 }
 0x61a   :  { %v661_v11 = vpop.eup %660 }
 0x61b   :  { %399 = vrot.lane.b32.xlu1 %v661_v11, %s788_s4 }
 0x68d   :  { %v400_v12 = vpop.permute.xlu1 %399 }
 0x68e   :  { %v402_v13 = vmul.f32 %v659_v2, %v400_v12 }
 0x690   :  { %v415_v14 = vpack.c.bf16 %v402_v13, %v402_v13  ;;  %404 = vrot.lane.b32.xlu1 %v402_v13, %s787_s20 }
 0x692   :  { %428 = vrot.lane.b32.xlu0 %v415_v14, %s787_s20  ;;  %s706_s20 = scalar_lea.vmem %s502_s25, 256 }
 0x693   :  { %p707_p2 = scmp.ne.s32.totalorder %s502_s25, %s706_s20  ;;  %p712_p4 = scmp.lt.s32.totalorder %s706_s20, %s706_s20 }
 0x694   :  { %410 = vrot.lane.b32.xlu1 %v396_v8, %s789_s24 }
 0x695   :  { %p713_p5 = por %p712_p4, %p711_p3 }
 0x696   :  { %279 = vrot.lane.b32.xlu0 %v944_v41, %s789_s24 }
 0x697   :  { %p714_p6 = pnand %p713_p5, %p707_p2 }
 0x702   :  { %v405_v15 = vpop.permute.xlu1 %404 }
 0x703   :  { %408 = vst.msk [vmem:[#allocation8 + $0x8] sm:$0xff] %vm160_vm3, %v405_v15 }
 0x704   :  { %v429_v16 = vpop.permute.xlu0 %428 }
 0x705   :  { %615 = vmatmul.mubr.msk.bf16.vlgmr.msra.gmra.mrb[4].mxu1 %vm160_vm3, %v429_v16 }
 0x706   :  { %v411_v1 = vpop.permute.xlu1 %410 }
 0x707   :  { %414 = vst.msk [vmem:[#allocation10 + $0x8] sm:$0xff] %vm160_vm3, %v411_v1 }
 0x708   :  { %v280_v17 = vpop.permute.xlu0 %279 }
 0x709   :  { %282 = vst.msk [vmem:[#allocation10] sm:$0xff] %vm160_vm3, %v280_v17 }
 0x70a   :  { %717 = shalt.err (!%p714_p6)
}
 0x70b   :  { %s718_s1 = scalar_lea.hbm %s1046_s11, 256 }
 0x70c   :  { %p719_p7 = scmp.ne.s32.totalorder %s1046_s11, %s718_s1  ;;  %p722_p8 = scmp.lt.u32.totalorder %s718_s1, %s1046_s11 }
 0x70e   :  { %p724_p9 = pnand %p722_p8, %p719_p7 }
 0x710   :  { %727 = shalt.err (!%p724_p9)
}
 0x711   :  { %507 = dma.vmem_to_hbm [thread:$0]  %s502_s25, 256, %s1046_s11, [#allocation9], %s781_s13, %s781_s13, %s782_s14  }
 0x712   :  { %s791_s30 = smov [#allocation10]  }
 0x713   :  { %s513_s15 = sshll.u32 %s791_s30, 4  ;;  %s514_s15 = int_to_ptr.vmem [resolvable:$true] %s513_s15 }
 0x714   :  { %s728_s3 = scalar_lea.vmem %s514_s15, 256  ;;  %p733_p11 = scmp.lt.s32.totalorder %s514_s15, %s514_s15 }
 0x715   :  { %p729_p10 = scmp.ne.s32.totalorder %s514_s15, %s728_s3  ;;  %p734_p12 = scmp.lt.s32.totalorder %s728_s3, %s728_s3 }
 0x717   :  { %p735_p13 = por %p734_p12, %p733_p11 }
 0x719   :  { %p736_p0 = pnand %p735_p13, %p729_p10 }
 0x71b   :  { %739 = shalt.err (!%p736_p0)
}
 0x71c   :  { %s740_s18 = scalar_lea.hbm %s1047_s12, 256 }
 0x71d   :  { %p741_p1 = scmp.ne.s32.totalorder %s1047_s12, %s740_s18  ;;  %p744_p2 = scmp.lt.u32.totalorder %s740_s18, %s1047_s12 }
 0x71f   :  { %p746_p3 = pnand %p744_p2, %p741_p1 }
 0x721   :  { %749 = shalt.err (!%p746_p3)
}
 0x722   :  { %519 = dma.vmem_to_hbm [thread:$0]  %s514_s15, 256, %s1047_s12, [#allocation9], %s781_s13, %s781_s13, %s782_s14  }
 0x723   :  { %v552_v18 = vld [vmem:[%s1044_s9] ss:$0 sm:$0xff]  ;;  %s792_s8 = smov [#allocation7]  }
 0x724   :  { %s492_s25 = sshll.u32 %s792_s8, 4  ;;  %s493_s25 = int_to_ptr.vmem [resolvable:$true] %s492_s25 }
 0x725   :  { %s750_s20 = scalar_lea.vmem %s493_s25, 128  ;;  %p755_p5 = scmp.lt.s32.totalorder %s493_s25, %s493_s25 }
 0x726   :  { %p751_p4 = scmp.ne.s32.totalorder %s493_s25, %s750_s20  ;;  %p756_p6 = scmp.lt.s32.totalorder %s750_s20, %s750_s20 }
 0x728   :  { %p757_p7 = por %p756_p6, %p755_p5 }
 0x72a   :  { %p758_p8 = pnand %p757_p7, %p751_p4 }
 0x7d8   :  { %v479_v19 = vpop.f32.mrb[4].mxu1 }
 0x7d9   :  { %v480_v20 = vadd.f32 %v552_v18, %v479_v19  ;;  %v616_v21 = vpop.f32.mrb[5].mxu1 }
 0x7da   :  { %v482_v22 = vpop.f32.mrb[6].mxu1 }
 0x7db   :  { %485 = vst.msk [vmem:[#allocation7] sm:$0xff] %vm110_vm2, %v480_v20  ;;  %v617_v23 = vpop.f32.mrb[7].mxu1 }
 0x7dc   :  { %761 = shalt.err (!%p758_p8)
}
 0x7dd   :  { %s762_s9 = scalar_lea.hbm %s1045_s10, 128 }
 0x7de   :  { %p763_p9 = scmp.ne.s32.totalorder %s1045_s10, %s762_s9  ;;  %p766_p10 = scmp.lt.u32.totalorder %s762_s9, %s1045_s10 }
 0x7e0   :  { %p768_p11 = pnand %p766_p10, %p763_p9 }
 0x7e2   :  { %771 = shalt.err (!%p768_p11)
}
 0x7e3   :  { %495 = dma.vmem_to_hbm [thread:$0]  %s493_s25, 128, %s1045_s10, [#allocation4]  }
 0x7e4   :  { %776 = dma.done.wait [#allocation4], 128  }
 0x7e5   :  { %777 = vsyncadd [#allocation4], 4294967168 }
 0x7e6   :  { %778 = dma.done.wait [#allocation9], 512  }
 0x7e7   :  { %779 = vsyncadd [#allocation9], 4294966784 }
 0x7e8   :  { %529 = vsyncpa [#allocation3], 1 }
 0x7e9   :  { %530 = vsyncpa [#allocation6], 1 }
 0x7ea   :  { %531 = vsyncpa [#allocation4], 1 }
 0x7eb   :  { %532 = vsyncpa [#allocation9], 1 }

</bundles_post_ra>
